<compile_context>
chip_gen: v7x
topology: tpu7x:2x2x1
jax: 0.10.0
libtpu: 0.0.40
codegen_flags: <defaults>
</compile_context>

<pallas_src>
import functools

import jax
import jax.numpy as jnp
from jax.experimental import pallas as pl
from jax.experimental.pallas import tpu as pltpu

C_PAD = 128        # every feature dim padded to one full lane width
_BN_EPS = 1e-5


def _encoder_fused_kernel(nreal_ref, slope_ref,               # SMEM (prefetch)
                          adj_hbm, x_hbm,                     # HBM (pl.ANY) refs
                          w_ref, gamma_ref, beta_ref,         # per-layer blocks
                          o_ref,                              # output (resident)
                          adj_vmem, act_ref, mask_ref, dma_sem):   # scratch
    """One encoder layer per grid step; A_hat / activations stay in VMEM.

       H   = A_hat @ (act @ W_l)            (GCNConv; bias cancelled by BN)
       act = PReLU_l(BatchNorm_l(H))        (training-mode batch statistics)
    """
    layer = pl.program_id(0)
    n_layers = pl.num_programs(0)
    n_pad, c_pad = act_ref.shape
    n_real = nreal_ref[0]

    # One-time setup: kick off the adjacency DMA, copy X into the resident
    # activation buffer, and build the real-row mask (hoisted out of layers).
    @pl.when(layer == 0)
    def _():
        pltpu.make_async_copy(adj_hbm, adj_vmem, dma_sem).start()
        pltpu.sync_copy(x_hbm, act_ref)
        row_ids = jax.lax.broadcasted_iota(jnp.int32, (n_pad, c_pad), 0)
        mask_ref[...] = (row_ids < n_real).astype(jnp.float32)

    # ---- GCNConv feature transform (MXU, bf16 operands, f32 accumulation).
    xw = jnp.dot(act_ref[...], w_ref[...], preferred_element_type=jnp.float32)

    # Adjacency DMA overlaps the X @ W matmul on the first layer.
    @pl.when(layer == 0)
    def _():
        pltpu.make_async_copy(adj_hbm, adj_vmem, dma_sem).wait()

    # ---- Neighborhood aggregation: H = A_hat @ (X W).
    h = jnp.dot(adj_vmem[...], xw.astype(jnp.bfloat16),
                preferred_element_type=jnp.float32)

    # ---- BatchNorm1d (training-mode statistics over the real node rows only).
    # Padded rows are masked out of the statistics and become exactly zero in
    # `centered`; padded feature columns are identically zero and stay zero.
    mask = mask_ref[...]
    inv_n = 1.0 / n_real.astype(jnp.float32)
    mean = jnp.sum(h * mask, axis=0, keepdims=True) * inv_n
    centered = (h - mean) * mask
    var = jnp.sum(centered * centered, axis=0, keepdims=True) * inv_n
    hn = centered * jax.lax.rsqrt(var + _BN_EPS)
    hn = hn * gamma_ref[...] + beta_ref[...]

    # ---- PReLU (single learnable slope per layer, read as an SMEM scalar).
    slope = slope_ref[layer]
    out = jnp.where(hn > 0.0, hn, slope * hn)

    # Feed the next layer (bf16 residency); the final layer writes only o_ref
    # (avoids a duplicate full-width store on the single-vst-slot v5e).
    @pl.when(layer < n_layers - 1)
    def _():
        act_ref[...] = out.astype(jnp.bfloat16)

    @pl.when(layer == n_layers - 1)
    def _():
        o_ref[...] = out


def _vmem_limit_bytes(n_pad):
    """Scoped-VMEM request sized to the resident buffers (+ margin)."""
    need = (
        n_pad * n_pad * 2            # resident A_hat scratch (bf16, single copy)
        + n_pad * C_PAD * 2          # resident activations (bf16)
        + n_pad * C_PAD * 4          # real-row mask (f32)
        + 2 * n_pad * C_PAD * 4      # f32 output block (double-buffered)
        + 2 * C_PAD * C_PAD * 2      # W_l blocks (double-buffered bf16)
        + 4 * 2 * C_PAD * 4          # gamma/beta blocks
        + 2 * n_pad * C_PAD * 4      # xw / h temporaries headroom
    )
    # 2x margin for compiler internals; clamp to v7x physical VMEM (64 MiB).
    return int(min(max(2 * need, 16 * 2**20), 64 * 2**20))


def _run_encoder(adj_bf16, x_pad, w_stk, gamma_stk, beta_stk, slopes, n_real):
    n_pad = x_pad.shape[0]
    n_layers = w_stk.shape[0]
    grid_spec = pltpu.PrefetchScalarGridSpec(
        num_scalar_prefetch=2,                       # n_real, PReLU slopes
        grid=(n_layers,),
        in_specs=[
            pl.BlockSpec(memory_space=pl.ANY),       # A_hat: one-time manual DMA
            pl.BlockSpec(memory_space=pl.ANY),       # X:     one-time manual DMA
            pl.BlockSpec((None, C_PAD, C_PAD), lambda l, *_: (l, 0, 0)),  # W_l
            pl.BlockSpec((None, 1, C_PAD), lambda l, *_: (l, 0, 0)),      # gamma_l
            pl.BlockSpec((None, 1, C_PAD), lambda l, *_: (l, 0, 0)),      # beta_l
        ],
        out_specs=pl.BlockSpec((n_pad, C_PAD), lambda l, *_: (0, 0)),
        scratch_shapes=[
            pltpu.VMEM((n_pad, n_pad), jnp.bfloat16),   # resident A_hat
            pltpu.VMEM((n_pad, C_PAD), jnp.bfloat16),   # resident activations
            pltpu.VMEM((n_pad, C_PAD), jnp.float32),    # real-row mask
            pltpu.SemaphoreType.DMA(()),                # adjacency DMA sem
        ],
    )
    return pl.pallas_call(
        _encoder_fused_kernel,
        out_shape=jax.ShapeDtypeStruct((n_pad, C_PAD), jnp.float32),
        grid_spec=grid_spec,
        compiler_params=pltpu.CompilerParams(
            dimension_semantics=("arbitrary",),      # layer axis is sequential
            vmem_limit_bytes=_vmem_limit_bytes(n_pad),
        ),
    )(n_real, slopes, adj_bf16, x_pad, w_stk, gamma_stk, beta_stk)


def build_normalized_adjacency(edge_index, edge_weight, num_nodes, n_pad):
    """Dense D^{-1/2}(A+I)D^{-1/2} (PyG GCNConv gcn_norm defaults), f32, padded."""
    src, dst = edge_index[0], edge_index[1]
    if edge_weight is None:
        edge_weight = jnp.ones(src.shape, jnp.float32)
    loop_idx = jnp.arange(num_nodes, dtype=src.dtype)
    src = jnp.concatenate([src, loop_idx])
    dst = jnp.concatenate([dst, loop_idx])
    ew = jnp.concatenate([edge_weight.astype(jnp.float32),
                          jnp.ones((num_nodes,), jnp.float32)])
    deg = jnp.zeros((num_nodes,), jnp.float32).at[dst].add(ew)
    dinv = jnp.where(deg > 0, jax.lax.rsqrt(deg), 0.0)
    norm = dinv[src] * ew * dinv[dst]
    # out[i] = sum_{edges j->i} norm * x[j]  =>  A_hat[i, j] += norm
    adj = jnp.zeros((n_pad, n_pad), jnp.float32).at[dst, src].add(norm)
    return adj


def prepare_graph(edge_index, edge_weight, num_nodes):
    """Build the padded bf16 adjacency ONCE (static graph -> cache and reuse)."""
    n_pad = max(16, ((num_nodes + 15) // 16) * 16)   # bf16-sublane-friendly pad
    adj = build_normalized_adjacency(edge_index, edge_weight, num_nodes, n_pad)
    # bf16 adjacency halves VMEM residency; keep f32 here if tighter parity is
    # ever required (VMEM permitting on v5e/v6e).
    return adj.astype(jnp.bfloat16)


def init_encoder_params(key, layer_config):
    """Parameters mirroring the PyTorch module (unpadded shapes)."""
    params = []
    for i in range(1, len(layer_config)):
        c_in, c_out = layer_config[i - 1], layer_config[i]
        key, wk = jax.random.split(key)
        limit = jnp.sqrt(6.0 / (c_in + c_out))       # glorot (PyG GCNConv default)
        w = jax.random.uniform(wk, (c_in, c_out), jnp.float32, -limit, limit)
        b = jnp.zeros((c_out,), jnp.float32)         # GCNConv bias (cancels in BN)
        gamma = jnp.ones((c_out,), jnp.float32)      # BatchNorm1d weight
        beta = jnp.zeros((c_out,), jnp.float32)      # BatchNorm1d bias
        a = jnp.float32(0.25)                        # PReLU slope
        params.append((w, b, gamma, beta, a))
    return params


def pack_encoder_params(params):
    """Zero-pad all layers to C_PAD lanes and stack along a leading layer axis.

    The GCNConv bias is NOT packed: with training-mode BatchNorm immediately
    after, a per-column constant is exactly cancelled by the mean subtraction.
    """
    w_l, g_l, bt_l, a_l = [], [], [], []
    for (w, _b, gamma, beta, a) in params:
        c_in, c_out = w.shape
        wp = jnp.zeros((C_PAD, C_PAD), jnp.float32).at[:c_in, :c_out].set(w)
        w_l.append(wp.astype(jnp.bfloat16))
        g_l.append(jnp.ones((1, C_PAD), jnp.float32).at[0, :c_out].set(gamma))
        bt_l.append(jnp.zeros((1, C_PAD), jnp.float32).at[0, :c_out].set(beta))
        a_l.append(a)
    return (jnp.stack(w_l), jnp.stack(g_l), jnp.stack(bt_l),
            jnp.stack(a_l).astype(jnp.float32))


@functools.partial(jax.jit, static_argnames=("num_nodes", "out_features"))
def encoder_forward(packed_params, x, adj_bf16, num_nodes, out_features):
    w_stk, g_stk, bt_stk, slopes = packed_params
    n_pad = adj_bf16.shape[0]
    x_pad = (jnp.zeros((n_pad, C_PAD), jnp.float32)
             .at[:num_nodes, :x.shape[1]].set(x)).astype(jnp.bfloat16)
    n_real = jnp.array([num_nodes], jnp.int32)
    out = _run_encoder(adj_bf16, x_pad, w_stk, g_stk, bt_stk, slopes, n_real)
    return out[:num_nodes, :out_features]


def encoder_reference(params, x, adj_f32):
    """Plain-JAX f32 reference of the PyTorch forward (for a sanity check)."""
    h = x
    for (w, b, gamma, beta, a) in params:
        h = adj_f32 @ (h @ w) + b
        mean = h.mean(axis=0, keepdims=True)
        var = ((h - mean) ** 2).mean(axis=0, keepdims=True)
        h = (h - mean) * jax.lax.rsqrt(var + _BN_EPS)
        h = h * gamma + beta
        h = jnp.where(h > 0, h, a * h)
    return h


if __name__ == "__main__":
    key = jax.random.PRNGKey(0)

    # Small shapes: 16 nodes, features 4 -> 32 -> 32 (two Encoder layers).
    num_nodes = 16
    layer_config = [4, 32, 32]

    key, xk, ek = jax.random.split(key, 3)
    x = jax.random.normal(xk, (num_nodes, layer_config[0]), jnp.float32)

    # Deterministic edge set: ring graph (both directions) + a few extra edges.
    ring_src = jnp.arange(num_nodes, dtype=jnp.int32)
    ring_dst = (ring_src + 1) % num_nodes
    extra_src = jnp.array([0, 3, 5, 7, 10, 12], dtype=jnp.int32)
    extra_dst = jnp.array([8, 11, 13, 2, 4, 6], dtype=jnp.int32)
    src = jnp.concatenate([ring_src, ring_dst, extra_src, extra_dst])
    dst = jnp.concatenate([ring_dst, ring_src, extra_dst, extra_src])
    edge_index = jnp.stack([src, dst], axis=0)
    edge_weight = jnp.abs(jax.random.normal(ek, (src.shape[0],), jnp.float32)) + 0.1

    params = init_encoder_params(key, layer_config)
    packed = pack_encoder_params(params)

    # Static graph: build + cast the normalized adjacency once, reuse per call.
    adj_bf16 = prepare_graph(edge_index, edge_weight, num_nodes)

    out = encoder_forward(packed, x, adj_bf16,
                          num_nodes=num_nodes, out_features=layer_config[-1])
    jax.block_until_ready(out)
    assert out.shape == (num_nodes, layer_config[-1])

    # Sanity check against an f32 reference (loose tolerance: bf16 matmul path).
    adj_ref = build_normalized_adjacency(edge_index, edge_weight, num_nodes,
                                         num_nodes)
    ref = encoder_reference(params, x, adj_ref)
    max_err = float(jnp.max(jnp.abs(out - ref)))
    assert max_err < 0.25, f"max abs error vs f32 reference: {max_err}"

    print("KERNEL_OK")
</pallas_src>

<mosaic_0001>
module attributes {stable_mosaic.version = 11 : i64} {
  func.func @_encoder_fused_kernel(%arg0: i32, %arg1: memref<1xi32, #tpu.memory_space<smem>>, %arg2: memref<2xf32, #tpu.memory_space<smem>>, %arg3: memref<16x16xbf16, #tpu.memory_space<any>>, %arg4: memref<16x128xbf16, #tpu.memory_space<any>>, %arg5: memref<1x128x128xbf16, #tpu.memory_space<vmem>>, %arg6: memref<1x1x128xf32, #tpu.memory_space<vmem>>, %arg7: memref<1x1x128xf32, #tpu.memory_space<vmem>>, %arg8: memref<16x128xf32, #tpu.memory_space<vmem>>, %arg9: memref<16x16xbf16, #tpu.memory_space<vmem>>, %arg10: memref<16x128xbf16, #tpu.memory_space<vmem>>, %arg11: memref<16x128xf32, #tpu.memory_space<vmem>>, %arg12: memref<!tpu.dma_semaphore, #tpu.memory_space<semaphore_mem>>) attributes {dimension_semantics = [#tpu.dimension_semantics<arbitrary>], iteration_bounds = array<i64: 2>, scalar_prefetch = 2 : i64, scratch_operands = 4 : i64, tpu.core_type = #tpu.core_type<tc>, window_params = [{}, {}, {transform_indices = @transform_2, window_bounds = array<i64: 1, 128, 128>}, {transform_indices = @transform_3, window_bounds = array<i64: 1, 1, 128>}, {transform_indices = @transform_4, window_bounds = array<i64: 1, 1, 128>}, {pipeline_mode = #tpu.pipeline_mode<synchronous>, transform_indices = @transform_5, window_bounds = array<i64: 16, 128>}]} {
    %c0 = arith.constant 0 : index
    %0 = memref.load %arg1[%c0] : memref<1xi32, #tpu.memory_space<smem>>
    %c0_i32 = arith.constant 0 : i32
    %1 = arith.cmpi eq, %arg0, %c0_i32 : i32
    %2 = arith.extui %1 : i1 to i32
    %c0_i32_0 = arith.constant 0 : i32
    %3 = arith.cmpi ne, %2, %c0_i32_0 : i32
    scf.if %3 {
      tpu.enqueue_dma source(%arg3 : memref<16x16xbf16, #tpu.memory_space<any>>) target(%arg9 : memref<16x16xbf16, #tpu.memory_space<vmem>>) target_semaphore(%arg12 : memref<!tpu.dma_semaphore, #tpu.memory_space<semaphore_mem>>)
      "tpu.region"() ({
        %62 = tpu.sem_alloc : memref<!tpu.dma_semaphore, #tpu.memory_space<semaphore_mem>>
        tpu.enqueue_dma source(%arg4 : memref<16x128xbf16, #tpu.memory_space<any>>) target(%arg10 : memref<16x128xbf16, #tpu.memory_space<vmem>>) target_semaphore(%62 : memref<!tpu.dma_semaphore, #tpu.memory_space<semaphore_mem>>)
        tpu.wait_dma2 semaphore(%62 : memref<!tpu.dma_semaphore, #tpu.memory_space<semaphore_mem>>) src(%arg4 : memref<16x128xbf16, #tpu.memory_space<any>>) dst(%arg10 : memref<16x128xbf16, #tpu.memory_space<vmem>>)
        tpu.yield
      }) : () -> ()
      %56 = tpu.iota {dimensions = array<i32: 0>} : vector<16x128xi32>
      %57 = vector.broadcast %0 : i32 to vector<16x128xi32>
      %58 = arith.cmpi slt, %56, %57 : vector<16x128xi32>
      %59 = arith.extui %58 : vector<16x128xi1> to vector<16x128xi32>
      %60 = arith.sitofp %59 : vector<16x128xi32> to vector<16x128xf32>
      %c0_27 = arith.constant 0 : index
      %c0_28 = arith.constant 0 : index
      %61 = vector.load %arg11[%c0_27, %c0_28] : memref<16x128xf32, #tpu.memory_space<vmem>>, vector<16x128xf32>
      tpu.vector_store %arg11[%c0_27, %c0_28], %60 {strides = array<i32>} : memref<16x128xf32, #tpu.memory_space<vmem>>, vector<16x128xf32>,
    } else {
    }
    %c0_1 = arith.constant 0 : index
    %c0_2 = arith.constant 0 : index
    %4 = vector.load %arg10[%c0_1, %c0_2] : memref<16x128xbf16, #tpu.memory_space<vmem>>, vector<16x128xbf16>
    %c0_3 = arith.constant 0 : index
    %c0_4 = arith.constant 0 : index
    %c0_5 = arith.constant 0 : index
    %5 = vector.load %arg5[%c0_3, %c0_4, %c0_5] : memref<1x128x128xbf16, #tpu.memory_space<vmem>>, vector<1x128x128xbf16>
    %6 = vector.shape_cast %5 : vector<1x128x128xbf16> to vector<128x128xbf16>
    %cst = arith.constant dense<0.000000e+00> : vector<16x128xf32>
    %7 = tpu.matmul %4, %6, %cst {dimension_numbers = #tpu.dot_dimension_numbers<[1], [0], [0], [1], [0, 0, 1, 1], [], []>} : vector<16x128xbf16>, vector<128x128xbf16>, vector<16x128xf32> -> vector<16x128xf32>
    %c0_i32_6 = arith.constant 0 : i32
    %8 = arith.cmpi eq, %arg0, %c0_i32_6 : i32
    %9 = arith.extui %8 : i1 to i32
    %c0_i32_7 = arith.constant 0 : i32
    %10 = arith.cmpi ne, %9, %c0_i32_7 : i32
    scf.if %10 {
      tpu.wait_dma2 semaphore(%arg12 : memref<!tpu.dma_semaphore, #tpu.memory_space<semaphore_mem>>) src(%arg3 : memref<16x16xbf16, #tpu.memory_space<any>>) dst(%arg9 : memref<16x16xbf16, #tpu.memory_space<vmem>>)
    } else {
    }
    %c0_8 = arith.constant 0 : index
    %c0_9 = arith.constant 0 : index
    %11 = vector.load %arg9[%c0_8, %c0_9] : memref<16x16xbf16, #tpu.memory_space<vmem>>, vector<16x16xbf16>
    %12 = arith.truncf %7 : vector<16x128xf32> to vector<16x128xbf16>
    %cst_10 = arith.constant dense<0.000000e+00> : vector<16x128xf32>
    %13 = tpu.matmul %11, %12, %cst_10 {dimension_numbers = #tpu.dot_dimension_numbers<[1], [0], [0], [1], [0, 0, 1, 1], [], []>} : vector<16x16xbf16>, vector<16x128xbf16>, vector<16x128xf32> -> vector<16x128xf32>
    %c0_11 = arith.constant 0 : index
    %c0_12 = arith.constant 0 : index
    %14 = vector.load %arg11[%c0_11, %c0_12] : memref<16x128xf32, #tpu.memory_space<vmem>>, vector<16x128xf32>
    %15 = arith.sitofp %0 : i32 to f32
    %cst_13 = arith.constant 1.000000e+00 : f32
    %16 = arith.divf %cst_13, %15 : f32
    %17 = arith.mulf %13, %14 : vector<16x128xf32>
    %cst_14 = arith.constant dense<0.000000e+00> : vector<128xf32>
    %18 = vector.multi_reduction <add>, %17, %cst_14 [0] : vector<16x128xf32> to vector<128xf32>
    %19 = vector.shape_cast %18 : vector<128xf32> to vector<1x128xf32>
    %20 = vector.broadcast %16 : f32 to vector<1x128xf32>
    %21 = arith.mulf %19, %20 : vector<1x128xf32>
    %22 = vector.broadcast %21 : vector<1x128xf32> to vector<16x128xf32>
    %23 = arith.subf %13, %22 : vector<16x128xf32>
    %24 = arith.mulf %23, %14 : vector<16x128xf32>
    %25 = arith.mulf %24, %24 : vector<16x128xf32>
    %cst_15 = arith.constant dense<0.000000e+00> : vector<128xf32>
    %26 = vector.multi_reduction <add>, %25, %cst_15 [0] : vector<16x128xf32> to vector<128xf32>
    %27 = vector.shape_cast %26 : vector<128xf32> to vector<1x128xf32>
    %28 = vector.broadcast %16 : f32 to vector<1x128xf32>
    %29 = arith.mulf %27, %28 : vector<1x128xf32>
    %cst_16 = arith.constant 9.99999974E-6 : f32
    %30 = vector.broadcast %cst_16 : f32 to vector<1x128xf32>
    %31 = arith.addf %29, %30 : vector<1x128xf32>
    %32 = math.rsqrt %31 : vector<1x128xf32>
    %33 = vector.broadcast %32 : vector<1x128xf32> to vector<16x128xf32>
    %34 = arith.mulf %24, %33 : vector<16x128xf32>
    %c0_17 = arith.constant 0 : index
    %c0_18 = arith.constant 0 : index
    %c0_19 = arith.constant 0 : index
    %35 = vector.load %arg6[%c0_17, %c0_18, %c0_19] : memref<1x1x128xf32, #tpu.memory_space<vmem>>, vector<1x1x128xf32>
    %36 = vector.shape_cast %35 : vector<1x1x128xf32> to vector<1x128xf32>
    %37 = vector.broadcast %36 : vector<1x128xf32> to vector<16x128xf32>
    %38 = arith.mulf %34, %37 : vector<16x128xf32>
    %c0_20 = arith.constant 0 : index
    %c0_21 = arith.constant 0 : index
    %c0_22 = arith.constant 0 : index
    %39 = vector.load %arg7[%c0_20, %c0_21, %c0_22] : memref<1x1x128xf32, #tpu.memory_space<vmem>>, vector<1x1x128xf32>
    %40 = vector.shape_cast %39 : vector<1x1x128xf32> to vector<1x128xf32>
    %41 = vector.broadcast %40 : vector<1x128xf32> to vector<16x128xf32>
    %42 = arith.addf %38, %41 : vector<16x128xf32>
    %43 = arith.index_cast %arg0 : i32 to index
    %44 = memref.load %arg2[%43] : memref<2xf32, #tpu.memory_space<smem>>
    %cst_23 = arith.constant 0.000000e+00 : f32
    %45 = vector.broadcast %cst_23 : f32 to vector<16x128xf32>
    %46 = arith.cmpf ogt, %42, %45 : vector<16x128xf32>
    %47 = vector.broadcast %44 : f32 to vector<16x128xf32>
    %48 = arith.mulf %47, %42 : vector<16x128xf32>
    %49 = arith.select %46, %42, %48 : vector<16x128xi1>, vector<16x128xf32>
    %c1_i32 = arith.constant 1 : i32
    %50 = arith.cmpi slt, %arg0, %c1_i32 : i32
    %51 = arith.extui %50 : i1 to i32
    %c0_i32_24 = arith.constant 0 : i32
    %52 = arith.cmpi ne, %51, %c0_i32_24 : i32
    scf.if %52 {
      %56 = arith.truncf %49 : vector<16x128xf32> to vector<16x128xbf16>
      %c0_27 = arith.constant 0 : index
      %c0_28 = arith.constant 0 : index
      %57 = vector.load %arg10[%c0_27, %c0_28] : memref<16x128xbf16, #tpu.memory_space<vmem>>, vector<16x128xbf16>
      tpu.vector_store %arg10[%c0_27, %c0_28], %56 {strides = array<i32>} : memref<16x128xbf16, #tpu.memory_space<vmem>>, vector<16x128xbf16>,
    } else {
    }
    %c1_i32_25 = arith.constant 1 : i32
    %53 = arith.cmpi eq, %arg0, %c1_i32_25 : i32
    %54 = arith.extui %53 : i1 to i32
    %c0_i32_26 = arith.constant 0 : i32
    %55 = arith.cmpi ne, %54, %c0_i32_26 : i32
    scf.if %55 {
      %c0_27 = arith.constant 0 : index
      %c0_28 = arith.constant 0 : index
      %56 = vector.load %arg8[%c0_27, %c0_28] : memref<16x128xf32, #tpu.memory_space<vmem>>, vector<16x128xf32>
      tpu.vector_store %arg8[%c0_27, %c0_28], %49 {strides = array<i32>} : memref<16x128xf32, #tpu.memory_space<vmem>>, vector<16x128xf32>,
    } else {
    }
    return
  }
  func.func @transform_2(%arg0: i32, %arg1: memref<1xi32, #tpu.memory_space<smem>>, %arg2: memref<2xf32, #tpu.memory_space<smem>>) -> (i32, i32, i32) {
    %c0_i32 = arith.constant 0 : i32
    %c0_i32_0 = arith.constant 0 : i32
    %c0_i32_1 = arith.constant 0 : i32
    return %arg0, %c0_i32, %c0_i32_0 : i32, i32, i32
  }
  func.func @transform_3(%arg0: i32, %arg1: memref<1xi32, #tpu.memory_space<smem>>, %arg2: memref<2xf32, #tpu.memory_space<smem>>) -> (i32, i32, i32) {
    %c0_i32 = arith.constant 0 : i32
    %c0_i32_0 = arith.constant 0 : i32
    %c0_i32_1 = arith.constant 0 : i32
    return %arg0, %c0_i32, %c0_i32_0 : i32, i32, i32
  }
  func.func @transform_4(%arg0: i32, %arg1: memref<1xi32, #tpu.memory_space<smem>>, %arg2: memref<2xf32, #tpu.memory_space<smem>>) -> (i32, i32, i32) {
    %c0_i32 = arith.constant 0 : i32
    %c0_i32_0 = arith.constant 0 : i32
    %c0_i32_1 = arith.constant 0 : i32
    return %arg0, %c0_i32, %c0_i32_0 : i32, i32, i32
  }
  func.func @transform_5(%arg0: i32, %arg1: memref<1xi32, #tpu.memory_space<smem>>, %arg2: memref<2xf32, #tpu.memory_space<smem>>) -> (i32, i32) {
    %c0_i32 = arith.constant 0 : i32
    %c0_i32_0 = arith.constant 0 : i32
    %c0_i32_1 = arith.constant 0 : i32
    return %c0_i32, %c0_i32_0 : i32, i32
  }
}

</mosaic_0001>

<bundles_post_ra>
// kernel: encoder_forward.1
= control target key start
LH: loop header
LB: loop body
LE: loop exit
PB: predicated region body
PF: predicated region fallthrough
CT: control target
= control target key end

     0   :  { %s1145_s0 = inlined_call_operand.<no memory space> [shape: s32[1], index: 0, kind: input, shape index: {}]   ;;  %s1146_s1 = inlined_call_operand.vmem [shape: f32[2], index: 1, kind: input, shape index: {}]   ;;  %s1147_s2 = inlined_call_operand.vmem [shape: bf16[16,16], index: 2, kind: input, shape index: {}]   ;;  %s1148_s3 = inlined_call_operand.vmem [shape: bf16[16,128], index: 3, kind: input, shape index: {}]   ;;  %s1149_s4 = inlined_call_operand.hbm [shape: bf16[2,128,128], index: 4, kind: input, shape index: {}]   ;;  %s1150_s5 = inlined_call_operand.vmem [shape: f32[2,1,128], index: 5, kind: input, shape index: {}]   ;;  %s1151_s6 = inlined_call_operand.vmem [shape: f32[2,1,128], index: 6, kind: input, shape index: {}]   ;;  %s1152_s7 = inlined_call_operand.hbm [shape: f32[16,128], index: 7, kind: output, shape index: {}]  }
   0x1   :  { %12 = sst [smem:[#allocation7]] %s1145_s0  ;;  %s13_s28 = sshll.u32 %s1146_s1, 4  ;;  %s14_s28 = int_to_ptr.vmem [resolvable:$true] %s13_s28 }
   0x2   :  { %s793_s29 = scalar_lea.vmem %s14_s28, 16  ;;  %p798_p1 = scmp.lt.s32.totalorder %s14_s28, %s14_s28 }
   0x3   :  { %p794_p0 = scmp.ne.s32.totalorder %s14_s28, %s793_s29  ;;  %p799_p2 = scmp.lt.s32.totalorder %s793_s29, %s793_s29 }
   0x5   :  { %p800_p3 = por %p799_p2, %p798_p1 }
   0x7   :  { %p801_p4 = pnand %p800_p3, %p794_p0 }
   0x9   :  { %804 = shalt.err (!%p801_p4)  }
   0xa   :  { %s909_s30 = smov [#allocation8]  }
   0xb   :  { %16 = dma.vmem_to_smem %s14_s28, 16, %s909_s30, [#allocation6] }
   0xc   :  { %877 = dma.done.wait [#allocation6], 16 }
   0xd   :  { %878 = vsyncadd [#allocation6], 4294967280 }
   0xe   :  { %18 = sfence }
   0xf   :  { %19 = vsyncpa [#allocation10], 0 }
  0x10   :  { %21 = vsyncpa [#allocation10 + $0x1], 0 }
  0x11   :  { %22 = vsyncpa [#allocation11], 0  ;;  %s965_s0 = smov 0   ;;  %s967_s8 = smov 0  }
  0x12   :  { %s969_s1 = smov 0   ;;  %s971_s9 = smov 0  }
  0x13 LB: > { %s984_s10 = sadd.s32 4294967295, %s907_s9   ;;  %s987_s11 = sadd.s32 1, %s907_s9   ;;  %s907_s9 = sphi %s971_s9, %s1162_s9   ;;  %s903_s1 = sphi %s969_s1, %s1161_s1   ;;  %s899_s8 = sphi %s967_s8, %s1160_s8   ;;  %s895_s0 = sphi %s965_s0, %s1159_s0  }
  0x14   : > { %s32_s12 = ssub.s32 %s907_s9, %s987_s11  ;;  %s35_s13 = sadd.s32 1, %s903_s1 }
  0x15   : > { %p33_p5 = scmp.eq.s32.totalorder %s32_s12, 0  ;;  %p42_p6 = scmp.ne.s32.totalorder %s903_s1, %s899_s8 }
  0x16   : > { %p43_p7 = scmp.eq.s32.totalorder %s907_s9, 0  ;;  %p48_p8 = scmp.ne.s32.totalorder %s899_s8, %s895_s0 }
  0x17   : > { %s997_s14 = scalar_select %p33_p5, %s903_s1, %s35_s13  }
  0x18   : > { %p44_p9 = por %p43_p7, %p42_p6  ;;  %p1153_p10 = scmp.eq.s32.totalorder %s984_s10, 0 }
  0x19   : > { %p736_p11 = scmp.lt.s32.totalorder %s907_s9, 2  ;;  %s145_s16 = sand.u32 1, %s903_s1  }
  0x1a   : > { %p1003_p12 = por %p1153_p10, %p48_p8  ;;  %s657_s17 = sshll.u32 %s145_s16, 6 }
  0x1b   : > { %s684_s18 = sshll.u32 %s907_s9, 10  ;;  %s149_s22 = scalar_lea.vmem [#allocation9], %s657_s17 }
  0x1c   : > { %s1012_s21 = scalar_lea.hbm %s1149_s4, %s684_s18  ;;  %s156_s23 = sshll.u32 %s149_s22, 4  ;;  %s1014_s23 = int_to_ptr.vmem [resolvable:$true] %s156_s23 }
  0x1d   : > { %p1016_p13 = pnand %p736_p11, %p44_p9  ;;  %s1021_s25 = scalar_lea.sflag [#allocation10], %s145_s16 }
  0x1e   : > { %s805_s26 = scalar_lea.hbm %s1012_s21, 1024  ;;  %s810_s29 = scalar_lea.hbm %s1149_s4, 2048 }
  0x1f   : > { %p806_p1 = scmp.ne.s32.totalorder %s1012_s21, %s805_s26  ;;  %p807_p2 = pneg %p1016_p13 }
  0x20   : > { %p811_p5 = scmp.lt.u32.totalorder %s1012_s21, %s1149_s4  ;;  %p812_p6 = scmp.lt.u32.totalorder %s810_s29, %s805_s26 }
  0x21   : > { %p808_p3 = pnand %p807_p2, %p806_p1  ;;  %p814_p8 = scmp.lt.u32.totalorder %s805_s26, %s1012_s21 }
  0x22   : > { %p813_p7 = por %p812_p6, %p811_p5 }
  0x23   : > { %p809_p4 = pneg %p808_p3 }
  0x24   : > { %p815_p9 = por %p814_p8, %p813_p7 }
  0x26   : > { %p816_p11 = pnand %p815_p9, %p809_p4 }
  0x28   : > { %819 = shalt.err (!%p816_p11)
}
  0x29   : > { %s820_s12 = scalar_lea.vmem %s1014_s23, 1024  ;;  %s910_s13 = smov [#allocation9]  }
  0x2a   : > { %p821_p1 = scmp.ne.s32.totalorder %s1014_s23, %s820_s12  ;;  %s825_s16 = sshll.u32 %s910_s13, 4  ;;  %s826_s16 = int_to_ptr.vmem [resolvable:$false] %s825_s16 }
  0x2b   : > { %s827_s17 = scalar_lea.vmem %s826_s16, 2048  ;;  %p828_p0 = scmp.lt.s32.totalorder %s1014_s23, %s826_s16 }
  0x2c   : > { %p823_p3 = pnand %p821_p1, %p807_p2  ;;  %p829_p5 = scmp.lt.s32.totalorder %s827_s17, %s820_s12 }
  0x2e   : > { %p824_p10 = pneg %p823_p3  ;;  %p830_p6 = por %p829_p5, %p828_p0 }
  0x30   : > { %p831_p7 = pnand %p830_p6, %p824_p10 }
  0x32   : > { %834 = shalt.err (!%p831_p7)
}
  0x33   : > { %s911_s18 = smov 64   ;;  %s912_s19 = smov 4  }
  0x34   : > { %735 = dma.hbm_to_vmem [thread:$0]  (!%p1016_p13), %s1012_s21, 1024, %s1014_s23, %s1021_s25, %s911_s18, %s911_s18, %s912_s19  }
  0x35   : > { %p176_p2 = scmp.lt.s32.totalorder %s907_s9, 3  ;;  %p1156_p4 = scmp.ge.s32.totalorder %s907_s9, 1 }
  0x37   : > { %p177_p8 = pnand %p1156_p4, %p176_p2 }
  0x38   : > { %s182_s20 = sand.u32 (!%p177_p8), 1, %s899_s8  }
  0x39   : > { %180 = sbr.rel (%p177_p8) target bundleno = 657 (0x291), region = 32  ;;  %s661_s22 = sshll.u32 (!%p177_p8), %s182_s20, 6 }
  0x3a   : > { %s183_s26 = scalar_lea.sflag (!%p177_p8), [#allocation10], %s182_s20  ;;  %s1053_s27 = scalar_lea.vmem (!%p177_p8), [#allocation9], %s661_s22 }
  0x40   : > { %880 = dma.done.wait (%p1003_p12), %s183_s26, 1024  }
  0x41   : > { %882 = vsyncadd (%p1003_p12), %s183_s26, 4294966272  ;;  %p210_p10 = scmp.lt.s32.totalorder %s984_s10, 1  ;;  %s1060_s21 = sld [smem:[#allocation7]] }
  0x42   : > { %p662_p13 = scmp.ne.s32.totalorder %s984_s10, 0 }
  0x43   : > { %s1063_s9 = scalar_select %p210_p10, %s984_s10, 1 }
  0x44   : > { %221 = sbr.rel (%p662_p13) target bundleno = 89 (0x59), region = 40  ;;  %v254_v0 = vld [vmem:[%s1147_s2] sm:$0xff] (!%p662_p13) }
  0x45   : > { %s212_s25 = scalar_lea.vmem %s1150_s5, %s1063_s9  ;;  %s215_s30 = scalar_lea.vmem %s1151_s6, %s1063_s9  ;;  %255 = vst [vmem:[#allocation2] sm:$0xff] (!%p662_p13), %v254_v0 }
  0x4b   : > { %263 = vsyncadd [#allocation5], 128 }
  0x4c   : > { %v296_v1 = vld [vmem:[%s1148_s3] sm:$0xff] }
  0x4d   : > { %297 = vst [vmem:[#allocation3] sm:$0xff] %v296_v1 }
  0x4e   : > { %305 = vsyncadd [#allocation14], 128 }
  0x4f   : > { %883 = dma.done.wait [#allocation14], 128 }
  0x50   : > { %884 = vsyncadd [#allocation14], 4294967168  ;;  %v310_v2 = vlaneseq  ;;  %v313_v3 = vstv %s1060_s21  ;;  %v913_v6 = vmov 0.0  }
  0x52   : > { %v311_v4 = vshrl.u32 %v310_v2, 7 }
  0x54   : > { %vm314_vm0 = vcmp.lt.s32.totalorder %v311_v4, %v313_v3  ;;  %v312_v5 = vadd.s32 8, %v311_v4 }
  0x55   : > { %v663_v7 = vsel %vm314_vm0, 1.0, %v913_v6 }
  0x56   : > { %320 = vst [vmem:[#allocation4] sm:$0xff] %v663_v7  ;;  %vm315_vm1 = vcmp.lt.s32.totalorder %v312_v5, %v313_v3 }
  0x57   : > { %v664_v8 = vsel %vm315_vm1, 1.0, %v913_v6 }
  0x58   : > { %321 = vst [vmem:[#allocation4 + $0x8] sm:$0xff] %v664_v8 }
  0x59 PF: > { %v781_v9 = vld [vmem:[%s1053_s27] sm:$0xff]   ;;  %v914_v10 = vmov 0.0   ;;  %v782_v11 = vld [vmem:[%s1053_s27 + $0x8] sm:$0xff]   ;;  %vm915_vm2 = vmmov 0   ;;  %v783_v12 = vld [vmem:[%s1053_s27 + $0x10] sm:$0xff]   ;;  %p1157_p12 = scmp.eq.s32.totalorder %s984_s10, 0 }
  0x5a   : > { %696 = vmatprep.subr.bf16.mxu0 %v914_v10  ;;  %712 = vmatprep.mubr.msk.bf16.mxu0 %vm915_vm2, %v914_v10  ;;  %v784_v13 = vld [vmem:[%s1053_s27 + $0x18] sm:$0xff]   ;;  %v785_v14 = vld [vmem:[%s1053_s27 + $0x20] sm:$0xff]   ;;  %v786_v15 = vld [vmem:[%s1053_s27 + $0x28] sm:$0xff]  }
  0x5b   : > { %697 = vmatpush3.bf16.msra.mxu0 %v781_v9  ;;  %v787_v16 = vld [vmem:[%s1053_s27 + $0x30] sm:$0xff]   ;;  %v788_v17 = vld [vmem:[%s1053_s27 + $0x38] sm:$0xff]   ;;  %v322_v18 = vld [vmem:[#allocation3] sm:$0xff] }
  0x5c   : > { %698 = vmatprep.subr.bf16.mxu0 %v914_v10 }
  0x5f   : > { %699 = vmatpush3.bf16.msra.mxu0 %v782_v11 }
  0x60   : > { %700 = vmatprep.subr.bf16.mxu0 %v914_v10 }
  0x63   : > { %701 = vmatpush3.bf16.msra.mxu0 %v783_v12 }
  0x64   : > { %702 = vmatprep.subr.bf16.mxu0 %v914_v10 }
  0x67   : > { %703 = vmatpush3.bf16.msra.mxu0 %v784_v13 }
  0x68   : > { %704 = vmatprep.subr.bf16.mxu0 %v914_v10 }
  0x6b   : > { %705 = vmatpush3.bf16.msra.mxu0 %v785_v14 }
  0x6c   : > { %706 = vmatprep.subr.bf16.mxu0 %v914_v10 }
  0x6f   : > { %707 = vmatpush3.bf16.msra.mxu0 %v786_v15 }
  0x70   : > { %708 = vmatprep.subr.bf16.mxu0 %v914_v10 }
  0x73   : > { %709 = vmatpush3.bf16.msra.mxu0 %v787_v16 }
  0x74   : > { %710 = vmatprep.subr.bf16.mxu0 %v914_v10 }
  0x77   : > { %711 = vmatpush3.bf16.msra.mxu0 %v788_v17 }
  0x7a   : > { %713 = vmatmul.mubr.bf16.vlgmr.msra.gmra.mrb[0].mxu0 %v322_v18 }
 0x14d   : > { %v421_v19 = vpop.f32.mrb[0].mxu0 }
 0x14e   : > { %v714_v20 = vpop.f32.mrb[1].mxu0 }
 0x14f   : > { %v424_v21 = vpop.f32.mrb[2].mxu0 }
 0x150   : > { %v715_v22 = vpop.f32.mrb[3].mxu0 }
 0x151   : > { %886 = dma.done.wait (%p1157_p12), [#allocation5], 128  ;;  %p1158_p0 = pmov %p1157_p12 }
 0x152   : > { %716 = vmatprep.subr.bf16.mxu1 %v914_v10  ;;  %v436_v23 = vpack.c.bf16 %v424_v21, %v421_v19  ;;  %718 = vmatprep.mubr.msk.bf16.mxu1 %vm915_vm2, %v914_v10  ;;  %s484_s16 = scvt.s32.f32 %s1060_s21  ;;  %vm437_vm3 = vcmask 130048   ;;  %v435_v25 = vld [vmem:[#allocation2] sm:$0xff]  ;;  %v482_v28 = vld [vmem:[#allocation4] sm:$0xff]  ;;  %v483_v29 = vld [vmem:[#allocation4 + $0x8] sm:$0xff]  ;;  %s535_s18 = sld [smem:[#allocation8 + %s984_s10]] }
 0x153   : > { %888 = vsyncadd (%p1158_p0), [#allocation5], 4294967168  ;;  %v675_v60 = vld [vmem:[%s212_s25] ss:$0 sm:$0xff]  ;;  %p677_p9 = scmp.ge.s32.totalorder %s984_s10, 1 }
 0x154   : > { %717 = vmatpush3.bf16.msra.mxu1 %v436_v23  ;;  %v485_v24 = vstv %s484_s16  ;;  %v676_v63 = vld [vmem:[%s215_s30] ss:$0 sm:$0xff] }
 0x155   : > { %789 = vrcp.f32 %v485_v24 }
 0x157   : > { %719 = vmatmul.mubr.msk.bf16.vlgmr.msra.gmra.mrb[0].mxu1 %vm437_vm3, %v435_v25 }
 0x158   : > { %v538_v2 = vstv %s535_s18 }
 0x15f   : > { %v790_v26 = vpop.eup %789 }
 0x160   : > { %722 = vpush %v790_v26 }
 0x191   : > { %s723_s17 = spop %722 }
 0x192   : > { %v497_v41 = vstv %s723_s17 }
 0x22a   : > { %v475_v27 = vpop.f32.mrb[0].mxu1 }
 0x22b   : > { %v720_v30 = vpop.f32.mrb[1].mxu1  ;;  %v488_v32 = vmul.f32 %v482_v28, %v475_v27 }
 0x22c   : > { %v478_v31 = vpop.f32.mrb[2].mxu1 }
 0x22d   : > { %v489_v33 = vmul.f32 %v483_v29, %v478_v31  ;;  %v721_v34 = vpop.f32.mrb[3].mxu1 }
 0x22f   : > { %v490_v35 = vadd.f32 %v489_v33, %v488_v32 }
 0x231   : > { %v491_v36 = vrot.slane %v490_v35, 4 }
 0x233   : > { %v492_v37 = vadd.f32 %v491_v36, %v490_v35 }
 0x235   : > { %v493_v38 = vrot.slane %v492_v37, 2 }
 0x237   : > { %v494_v39 = vadd.f32 %v493_v38, %v492_v37 }
 0x239   : > { %v495_v40 = vrot.slane %v494_v39, 1 }
 0x23b   : > { %v496_v42 = vadd.f32 %v495_v40, %v494_v39 }
 0x23d   : > { %v498_v43 = vmul.f32 %v497_v41, %v496_v42 }
 0x23f   : > { %v499_v44 = vsub.f32 %v475_v27, %v498_v43  ;;  %v500_v45 = vsub.f32 %v478_v31, %v498_v43 }
 0x241   : > { %v501_v46 = vmul.f32 %v499_v44, %v482_v28  ;;  %v502_v47 = vmul.f32 %v500_v45, %v483_v29 }
 0x243   : > { %v503_v48 = vmul.f32 %v501_v46, %v501_v46  ;;  %v504_v49 = vmul.f32 %v502_v47, %v502_v47 }
 0x245   : > { %v505_v50 = vadd.f32 %v504_v49, %v503_v48 }
 0x247   : > { %v506_v51 = vrot.slane %v505_v50, 4 }
 0x249   : > { %v507_v52 = vadd.f32 %v506_v51, %v505_v50 }
 0x24b   : > { %v508_v53 = vrot.slane %v507_v52, 2 }
 0x24d   : > { %v509_v54 = vadd.f32 %v508_v53, %v507_v52 }
 0x24f   : > { %v510_v55 = vrot.slane %v509_v54, 1 }
 0x251   : > { %v511_v56 = vadd.f32 %v510_v55, %v509_v54 }
 0x253   : > { %v512_v57 = vmul.f32 %v511_v56, %v497_v41 }
 0x255   : > { %v513_v58 = vadd.f32 1e-05, %v512_v57 }
 0x257   : > { %791 = vrsqrt.f32 %v513_v58 }
 0x261   : > { %v792_v59 = vpop.eup %791 }
 0x262   : > { %v515_v61 = vmul.f32 %v792_v59, %v501_v46  ;;  %v516_v62 = vmul.f32 %v792_v59, %v502_v47 }
 0x264   : > { %v524_v0 = vmul.f32 %v675_v60, %v515_v61  ;;  %v525_v1 = vmul.f32 %v675_v60, %v516_v62  ;;  %546 = sbr.rel (%p677_p9) target bundleno = 622 (0x26e), region = 117 }
 0x266   : > { %v533_v3 = vadd.f32 %v676_v63, %v524_v0  ;;  %v534_v4 = vadd.f32 %v676_v63, %v525_v1 }
 0x268   : > { %vm536_vm4 = vcmp.gt.f32.partialorder %v533_v3, 0.0  ;;  %vm537_vm5 = vcmp.gt.f32.partialorder %v534_v4, 0.0  ;;  %v539_v5 = vmul.f32 %v538_v2, %v533_v3  ;;  %v540_v6 = vmul.f32 %v538_v2, %v534_v4 }
 0x26a   : > { %v541_v7 = vsel %vm536_vm4, %v533_v3, %v539_v5  ;;  %v542_v8 = vsel %vm537_vm5, %v534_v4, %v540_v6 }
 0x26b   : > { %v547_v9 = vpack.c.bf16 %v542_v8, %v541_v7 }
 0x26d   : > { %548 = vst [vmem:[#allocation3] sm:$0xff] %v547_v9 }
 0x26e PF: > { %p678_p11 = scmp.ne.s32.totalorder %s984_s10, 1 }
 0x26f   : > { %553 = vst [vmem:[#allocation12] sm:$0xff] (!%p678_p11), %v541_v7  ;;  %554 = vst [vmem:[#allocation12 + $0x8] sm:$0xff] (!%p678_p11), %v542_v8 }
 0x270   : > { %552 = sbr.rel (%p678_p11) target bundleno = 631 (0x277), region = 121 }
 0x277 PF: > { %p738_p1 = scmp.eq.s32.totalorder %s984_s10, 1  ;;  %s916_s27 = smov [#allocation12]  }
 0x278   : > { %s561_s21 = sshll.u32 %s916_s27, 4  ;;  %s562_s21 = int_to_ptr.vmem [resolvable:$true] %s561_s21 }
 0x279   : > { %s835_s9 = scalar_lea.vmem %s562_s21, 256  ;;  %p842_p7 = scmp.lt.s32.totalorder %s562_s21, %s562_s21 }
 0x27a   : > { %p836_p3 = scmp.ne.s32.totalorder %s562_s21, %s835_s9  ;;  %p843_p2 = scmp.lt.s32.totalorder %s835_s9, %s835_s9 }
 0x27c   : > { %p837_p5 = pnand %p836_p3, %p738_p1  ;;  %p844_p4 = por %p843_p2, %p842_p7 }
 0x27e   : > { %p838_p6 = pneg %p837_p5 }
 0x280   : > { %p845_p8 = pnand %p844_p4, %p838_p6 }
 0x282   : > { %848 = shalt.err (!%p845_p8)
}
 0x283   : > { %s849_s25 = scalar_lea.hbm %s1152_s7, 256 }
 0x284   : > { %p850_p10 = scmp.ne.s32.totalorder %s1152_s7, %s849_s25  ;;  %p855_p0 = scmp.lt.u32.totalorder %s849_s25, %s1152_s7 }
 0x286   : > { %p851_p13 = pnand %p850_p10, %p738_p1 }
 0x288   : > { %p852_p12 = pneg %p851_p13 }
 0x28a   : > { %p857_p9 = pnand %p855_p0, %p852_p12 }
 0x28c   : > { %860 = shalt.err (!%p857_p9)
}
 0x28d   : > { %s917_s0 = smov 128   ;;  %s918_s12 = smov 8  }
 0x28e   : > { %729 = dma.vmem_to_hbm [thread:$0]  (%p738_p1), %s562_s21, 256, %s1152_s7, [#allocation11], %s917_s0, %s917_s0, %s918_s12  }
 0x28f   : > { %890 = dma.done.wait (%p738_p1), [#allocation11], 256  }
 0x290   : > { %892 = vsyncadd (%p738_p1), [#allocation11], 4294967040 }
 0x291 PF: > { %p25_p11 = scmp.ge.s32.totalorder %s987_s11, 4   ;;  %s1159_s0 = smov %s899_s8 }
 0x292   : > { %s1160_s8 = smov %s903_s1  ;;  %s1161_s1 = smov %s997_s14 }
 0x293   : > { %s1162_s9 = smov %s987_s11  ;;  %27 = sbr.rel (!%p25_p11) target bundleno = 19 (0x13), region = 176 }
 0x29a   :  { %577 = vsyncpa [#allocation10], 1 }
 0x29b   :  { %579 = vsyncpa [#allocation10 + $0x1], 1 }
 0x29c   :  { %580 = vsyncpa [#allocation11], 1 }
 0x29d   :  { %582 = vsyncpa [#allocation11 + $0x1], 1 }
 0x29e   :  { %583 = vsyncmov [#allocation5] }
 0x2a1   :  { %s584_s10 = vpop.sfrf %583 }
 0x2a2   :  { %p683_p1 = scmp.ne.s32.totalorder %s584_s10, 0 }
 0x2a4   :  { %588 = shalt.err (%p683_p1)  }

</bundles_post_ra>
